<compile_context>
chip_gen: v6e
topology: v6e:2x2x1
jax: 0.10.0
libtpu: 0.0.40
codegen_flags: <defaults>
</compile_context>

<pallas_src>
import functools

import jax
import jax.numpy as jnp
from jax.experimental import pallas as pl
from jax.experimental.pallas import tpu as pltpu

HIDDEN = 128           # fixed by the module definition (nn.Linear(nStateDim, 128))
LANE = 128             # TPU lane width; output N dim is padded to a multiple of this
MIN_PALLAS_BATCH = 64  # below this, launch + per-call weight DMA dominates -> plain XLA


def _round_up(n, m):
    return ((n + m - 1) // m) * m


def _brain_kernel(x_ref, w1_ref, b1_ref, w2_ref, b2_ref, o_ref):
    # Layer 1: bf16 operands on the MXU, f32 accumulation; bias folded into the
    # f32 accumulator before the ReLU (broadcast happens once, on acc shape).
    h = jnp.dot(x_ref[...], w1_ref[...], preferred_element_type=jnp.float32)
    h = jnp.maximum(h + b1_ref[...], 0.0)
    # Layer 2: cast activations back to bf16 for the MXU; accumulate in f32.
    y = jnp.dot(h.astype(w2_ref.dtype), w2_ref[...],
                preferred_element_type=jnp.float32)
    o_ref[...] = (y + b2_ref[...]).astype(o_ref.dtype)


@functools.partial(jax.jit, static_argnames=("tm",))
def _brain_forward_pallas(x, w1, b1, w2, b2, *, tm):
    B, D = x.shape
    A = w2.shape[1]
    a_pad = _round_up(A, LANE)          # lane-dense output block
    b_pad = _round_up(B, tm)            # whole number of batch tiles

    # bf16 operands (MXU-native on v5e/v6e/v7x); biases stay f32.
    x_bf = x.astype(jnp.bfloat16)
    if b_pad != B:
        x_bf = jnp.pad(x_bf, ((0, b_pad - B), (0, 0)))
    w1_bf = w1.astype(jnp.bfloat16)
    w2_bf = jnp.pad(w2.astype(jnp.bfloat16), ((0, 0), (0, a_pad - A)))
    b1_f = b1.astype(jnp.float32).reshape(1, HIDDEN)
    b2_f = jnp.pad(b2.astype(jnp.float32).reshape(1, A), ((0, 0), (0, a_pad - A)))

    grid = (b_pad // tm,)

    cost = pl.CostEstimate(
        flops=2 * b_pad * (D * HIDDEN + HIDDEN * a_pad),
        transcendentals=0,
        bytes_accessed=(b_pad * D * 2            # x (bf16)
                        + D * HIDDEN * 2         # W1 (bf16)
                        + HIDDEN * 4             # b1 (f32)
                        + HIDDEN * a_pad * 2     # W2 (bf16, padded)
                        + a_pad * 4              # b2 (f32, padded)
                        + b_pad * a_pad * 4),    # out (f32)
    )

    out = pl.pallas_call(
        _brain_kernel,
        out_shape=jax.ShapeDtypeStruct((b_pad, a_pad), jnp.float32),
        grid_spec=pltpu.PrefetchScalarGridSpec(
            num_scalar_prefetch=0,
            grid=grid,
            in_specs=[
                pl.BlockSpec((tm, D), lambda i: (i, 0)),          # x: streamed per tile
                pl.BlockSpec((D, HIDDEN), lambda i: (0, 0)),      # W1: VMEM-resident
                pl.BlockSpec((1, HIDDEN), lambda i: (0, 0)),      # b1: VMEM-resident
                pl.BlockSpec((HIDDEN, a_pad), lambda i: (0, 0)),  # W2: VMEM-resident
                pl.BlockSpec((1, a_pad), lambda i: (0, 0)),       # b2: VMEM-resident
            ],
            out_specs=pl.BlockSpec((tm, a_pad), lambda i: (i, 0)),
        ),
        compiler_params=pltpu.CompilerParams(
            dimension_semantics=("parallel",),   # shard batch tiles across TCs (v7x)
        ),
        cost_estimate=cost,
    )(x_bf, w1_bf, b1_f, w2_bf, b2_f)

    return out[:B, :A]


def brain_forward(x, w1, b1, w2, b2):
    """Forward pass of Brain. Accepts x of shape (D,) or (B, D)."""
    if x.ndim == 1:
        x = x[None, :]                   # mimic torch unsqueeze(0)
    B = x.shape[0]
    if B < MIN_PALLAS_BATCH:
        # Tiny-batch inference: the whole forward is ~2 small matmuls, so the
        # pallas_call launch + per-call weight DMA would dominate. Let XLA fuse.
        # TODO(synk): for sustained small-batch serving, keep weights VMEM-resident
        # across calls (cross-call prefetch) instead of re-sending them every step.
        x32 = x.astype(jnp.float32)
        h = jnp.maximum(x32 @ w1.astype(jnp.float32) + b1, 0.0)
        return h @ w2.astype(jnp.float32) + b2
    tm = min(512, _round_up(B, 8))       # 512 ~ measured HBM-roofline sweet spot
    return _brain_forward_pallas(x, w1, b1, w2, b2, tm=tm)


def init_brain_params(key, n_state_dim, n_actions):
    """Deterministic init mirroring nn.Linear's default (uniform +/- 1/sqrt(fan_in))."""
    k1, k2, k3, k4 = jax.random.split(key, 4)
    bound1 = 1.0 / jnp.sqrt(jnp.float32(n_state_dim))
    bound2 = 1.0 / jnp.sqrt(jnp.float32(HIDDEN))
    # Stored as (in, out) so the kernel computes x @ W + b (== torch x @ W.T + b).
    w1 = jax.random.uniform(k1, (n_state_dim, HIDDEN), jnp.float32, -bound1, bound1)
    b1 = jax.random.uniform(k2, (1, HIDDEN), jnp.float32, -bound1, bound1)
    w2 = jax.random.uniform(k3, (HIDDEN, n_actions), jnp.float32, -bound2, bound2)
    b2 = jax.random.uniform(k4, (1, n_actions), jnp.float32, -bound2, bound2)
    return w1, b1, w2, b2


if __name__ == "__main__":
    key = jax.random.PRNGKey(0)
    n_state_dim, n_actions = 32, 8

    kx, kp = jax.random.split(key)
    w1, b1, w2, b2 = init_brain_params(kp, n_state_dim, n_actions)

    def ref_forward(xr):
        return jnp.maximum(xr @ w1 + b1, 0.0) @ w2 + b2

    # 1) Batched rollout path -> Pallas kernel with a multi-step grid (1024 / 512 tiles).
    x_big = jax.random.normal(kx, (1024, n_state_dim), jnp.float32)
    out_big = brain_forward(x_big, w1, b1, w2, b2)
    jax.block_until_ready(out_big)
    assert out_big.shape == (1024, n_actions)
    assert jnp.allclose(out_big, ref_forward(x_big), atol=5e-2, rtol=5e-2)

    # 2) Ragged batch -> exercises batch padding + output slicing in the wrapper.
    x_ragged = x_big[:100]
    out_ragged = _brain_forward_pallas(
        x_ragged, w1, b1, w2, b2, tm=min(512, _round_up(100, 8)))
    jax.block_until_ready(out_ragged)
    assert out_ragged.shape == (100, n_actions)
    assert jnp.allclose(out_ragged, ref_forward(x_ragged), atol=5e-2, rtol=5e-2)

    # 3) Tiny batch + 1-D input path (torch unsqueeze(0) behavior) -> jnp fallback.
    out_small = brain_forward(x_big[0], w1, b1, w2, b2)
    jax.block_until_ready(out_small)
    assert out_small.shape == (1, n_actions)
    assert jnp.allclose(out_small, ref_forward(x_big[:1]), atol=1e-5, rtol=1e-5)

    print("KERNEL_OK")
</pallas_src>

<mosaic_0001>
module attributes {stable_mosaic.version = 11 : i64} {
  func.func @_brain_kernel(%arg0: i32, %arg1: memref<512x32xbf16, #tpu.memory_space<vmem>>, %arg2: memref<32x128xbf16, #tpu.memory_space<vmem>>, %arg3: memref<1x128xf32, #tpu.memory_space<vmem>>, %arg4: memref<128x128xbf16, #tpu.memory_space<vmem>>, %arg5: memref<1x128xf32, #tpu.memory_space<vmem>>, %arg6: memref<512x128xf32, #tpu.memory_space<vmem>>) attributes {dimension_semantics = [#tpu.dimension_semantics<parallel>], iteration_bounds = array<i64: 2>, scalar_prefetch = 0 : i64, scratch_operands = 0 : i64, tpu.core_type = #tpu.core_type<tc>, window_params = [{transform_indices = @transform_0, window_bounds = array<i64: 512, 32>}, {pipeline_mode = #tpu.pipeline_mode<synchronous>, transform_indices = @transform_1, window_bounds = array<i64: 32, 128>}, {pipeline_mode = #tpu.pipeline_mode<synchronous>, transform_indices = @transform_2, window_bounds = array<i64: 1, 128>}, {pipeline_mode = #tpu.pipeline_mode<synchronous>, transform_indices = @transform_3, window_bounds = array<i64: 128, 128>}, {pipeline_mode = #tpu.pipeline_mode<synchronous>, transform_indices = @transform_4, window_bounds = array<i64: 1, 128>}, {transform_indices = @transform_5, window_bounds = array<i64: 512, 128>}]} {
    %c0 = arith.constant 0 : index
    %c0_0 = arith.constant 0 : index
    %0 = vector.load %arg1[%c0, %c0_0] : memref<512x32xbf16, #tpu.memory_space<vmem>>, vector<512x32xbf16>
    %c0_1 = arith.constant 0 : index
    %c0_2 = arith.constant 0 : index
    %1 = vector.load %arg2[%c0_1, %c0_2] : memref<32x128xbf16, #tpu.memory_space<vmem>>, vector<32x128xbf16>
    %cst = arith.constant dense<0.000000e+00> : vector<512x128xf32>
    %2 = tpu.matmul %0, %1, %cst {dimension_numbers = #tpu.dot_dimension_numbers<[1], [0], [0], [1], [0, 0, 1, 1], [], []>} : vector<512x32xbf16>, vector<32x128xbf16>, vector<512x128xf32> -> vector<512x128xf32>
    %c0_3 = arith.constant 0 : index
    %c0_4 = arith.constant 0 : index
    %3 = vector.load %arg3[%c0_3, %c0_4] : memref<1x128xf32, #tpu.memory_space<vmem>>, vector<1x128xf32>
    %4 = vector.broadcast %3 : vector<1x128xf32> to vector<512x128xf32>
    %5 = arith.addf %2, %4 : vector<512x128xf32>
    %cst_5 = arith.constant 0.000000e+00 : f32
    %6 = vector.broadcast %cst_5 : f32 to vector<512x128xf32>
    %7 = arith.maximumf %5, %6 : vector<512x128xf32>
    %8 = arith.truncf %7 : vector<512x128xf32> to vector<512x128xbf16>
    %c0_6 = arith.constant 0 : index
    %c0_7 = arith.constant 0 : index
    %9 = vector.load %arg4[%c0_6, %c0_7] : memref<128x128xbf16, #tpu.memory_space<vmem>>, vector<128x128xbf16>
    %cst_8 = arith.constant dense<0.000000e+00> : vector<512x128xf32>
    %10 = tpu.matmul %8, %9, %cst_8 {dimension_numbers = #tpu.dot_dimension_numbers<[1], [0], [0], [1], [0, 0, 1, 1], [], []>} : vector<512x128xbf16>, vector<128x128xbf16>, vector<512x128xf32> -> vector<512x128xf32>
    %c0_9 = arith.constant 0 : index
    %c0_10 = arith.constant 0 : index
    %11 = vector.load %arg5[%c0_9, %c0_10] : memref<1x128xf32, #tpu.memory_space<vmem>>, vector<1x128xf32>
    %12 = vector.broadcast %11 : vector<1x128xf32> to vector<512x128xf32>
    %13 = arith.addf %10, %12 : vector<512x128xf32>
    %c0_11 = arith.constant 0 : index
    %c0_12 = arith.constant 0 : index
    %14 = vector.load %arg6[%c0_11, %c0_12] : memref<512x128xf32, #tpu.memory_space<vmem>>, vector<512x128xf32>
    tpu.vector_store %arg6[%c0_11, %c0_12], %13 {strides = array<i32>} : memref<512x128xf32, #tpu.memory_space<vmem>>, vector<512x128xf32>,
    return
  }
  func.func @transform_0(%arg0: i32) -> (i32, i32) {
    %c0_i32 = arith.constant 0 : i32
    %c0_i32_0 = arith.constant 0 : i32
    return %arg0, %c0_i32 : i32, i32
  }
  func.func @transform_1(%arg0: i32) -> (i32, i32) {
    %c0_i32 = arith.constant 0 : i32
    %c0_i32_0 = arith.constant 0 : i32
    %c0_i32_1 = arith.constant 0 : i32
    return %c0_i32, %c0_i32_0 : i32, i32
  }
  func.func @transform_2(%arg0: i32) -> (i32, i32) {
    %c0_i32 = arith.constant 0 : i32
    %c0_i32_0 = arith.constant 0 : i32
    %c0_i32_1 = arith.constant 0 : i32
    return %c0_i32, %c0_i32_0 : i32, i32
  }
  func.func @transform_3(%arg0: i32) -> (i32, i32) {
    %c0_i32 = arith.constant 0 : i32
    %c0_i32_0 = arith.constant 0 : i32
    %c0_i32_1 = arith.constant 0 : i32
    return %c0_i32, %c0_i32_0 : i32, i32
  }
  func.func @transform_4(%arg0: i32) -> (i32, i32) {
    %c0_i32 = arith.constant 0 : i32
    %c0_i32_0 = arith.constant 0 : i32
    %c0_i32_1 = arith.constant 0 : i32
    return %c0_i32, %c0_i32_0 : i32, i32
  }
  func.func @transform_5(%arg0: i32) -> (i32, i32) {
    %c0_i32 = arith.constant 0 : i32
    %c0_i32_0 = arith.constant 0 : i32
    return %arg0, %c0_i32 : i32, i32
  }
}

</mosaic_0001>

<bundles_post_ra>
// kernel: _brain_forward_pallas.1
= control target key start
LH: loop header
LB: loop body
LE: loop exit
PB: predicated region body
PF: predicated region fallthrough
CT: control target
= control target key end

     0   :  { %s1851_s18 = smov 0   ;;  %s2172_s0 = inlined_call_operand.vmem [shape: bf16[1024,32], index: 0, kind: input, shape index: {}]   ;;  %s2173_s1 = inlined_call_operand.vmem [shape: bf16[32,128], index: 1, kind: input, shape index: {}]   ;;  %s2174_s2 = inlined_call_operand.vmem [shape: f32[1,128], index: 2, kind: input, shape index: {}]   ;;  %s2175_s3 = inlined_call_operand.vmem [shape: bf16[128,128], index: 3, kind: input, shape index: {}]   ;;  %s2176_s4 = inlined_call_operand.vmem [shape: f32[1,128], index: 4, kind: input, shape index: {}]   ;;  %s2177_s5 = inlined_call_operand.vmem [shape: f32[1024,128], index: 5, kind: output, shape index: {}]  }
   0x1 LB: > { %s1438_s19 = sadd.s32 4294967295, %s1819_s18   ;;  %p1442_p0 = scmp.ge.s32.totalorder %s1819_s18, 1  ;;  %s1819_s18 = sphi %s1851_s18, %s15_s18  }
   0x2   : > { %p188_p1 = scmp.lt.s32.totalorder %s1819_s18, 3 }
   0x4   : > { %p189_p2 = pnand %p1442_p0, %p188_p1 }
   0x5   : > { %s1443_s22 = sshll.u32 (!%p189_p2), %s1438_s19, 6 }
   0x6   : > { %192 = sbr.rel (%p189_p2) target bundleno = 548 (0x224), region = 40  ;;  %p217_p3 = scmp.lt.s32.totalorder (!%p189_p2), %s1443_s22, 127 }
   0xb   : > { %v1771_v0 = vld [vmem:[%s2173_s1 + $0x8] sm:$0xff]   ;;  %v1772_v1 = vld [vmem:[%s2173_s1] sm:$0xff]   ;;  %v1805_v2 = vld [vmem:[%s2175_s3 + $0x38] sm:$0xff]   ;;  %s2179_s22 = smov (!%p217_p3, %s1443_s22), 127  ;;  %vm476_vm0 = vcmask 261120  }
   0xc   : > { %1599 = vmatprep.subr.bf16.mxu0 %v1771_v0  ;;  %v1806_v3 = vld [vmem:[%s2175_s3 + $0x30] sm:$0xff]   ;;  %1747 = vmatprep.subr.bf16.mxu1 %v1805_v2  ;;  %s1444_s29 = sshll.u32 %s2179_s22, 2  ;;  %v1807_v4 = vld [vmem:[%s2175_s3 + $0x28] sm:$0xff]   ;;  %v1808_v8 = vld [vmem:[%s2175_s3 + $0x20] sm:$0xff]   ;;  %s1446_s24 = sshll.u32 %s2179_s22, 3 }
   0xd   : > { %1600 = vmatpush3.bf16.msra.mxu0 %v1771_v0  ;;  %1755 = vmatpush3.bf16.msra.mxu1 %v1805_v2  ;;  %s1877_s7 = scalar_lea.vmem %s2172_s0, %s1444_s29  ;;  %v1809_v11 = vld [vmem:[%s2175_s3 + $0x18] sm:$0xff]   ;;  %v1810_v26 = vld [vmem:[%s2175_s3 + $0x10] sm:$0xff]   ;;  %v1811_v28 = vld [vmem:[%s2175_s3 + $0x8] sm:$0xff]   ;;  %s2039_s29 = scalar_lea.vmem %s2177_s5, %s1446_s24 }
   0xe   : > { %1601 = vmatprep.subr.bf16.mxu0 %v1772_v1  ;;  %1748 = vmatprep.subr.bf16.mxu1 %v1806_v3  ;;  %v1773_v5 = vld [vmem:[%s1877_s7] sm:$0xff]   ;;  %v1774_v6 = vld [vmem:[%s1877_s7 + $0x8] sm:$0xff]   ;;  %v1775_v7 = vld [vmem:[%s1877_s7 + $0x10] sm:$0xff]  }
   0xf   : > { %1603 = vmatprep.mubr.msk.bf16.mxu0 %vm476_vm0, %v1773_v5  ;;  %v1776_v9 = vld [vmem:[%s1877_s7 + $0x18] sm:$0xff]   ;;  %v1777_v10 = vld [vmem:[%s1877_s7 + $0x20] sm:$0xff]   ;;  %v1778_v12 = vld [vmem:[%s1877_s7 + $0x28] sm:$0xff]  }
  0x10   : > { %v1779_v13 = vld [vmem:[%s1877_s7 + $0x30] sm:$0xff]   ;;  %v1780_v14 = vld [vmem:[%s1877_s7 + $0x38] sm:$0xff]   ;;  %v1781_v15 = vld [vmem:[%s1877_s7 + $0x40] sm:$0xff]  }
  0x11   : > { %1602 = vmatpush3.bf16.msra.mxu0 %v1772_v1  ;;  %1756 = vmatpush3.bf16.msra.mxu1 %v1806_v3  ;;  %v1782_v16 = vld [vmem:[%s1877_s7 + $0x48] sm:$0xff]   ;;  %v1783_v17 = vld [vmem:[%s1877_s7 + $0x50] sm:$0xff]   ;;  %v1784_v18 = vld [vmem:[%s1877_s7 + $0x58] sm:$0xff]  }
  0x12   : > { %1667 = vmatprep.subr.bf16.mxu0 %v1805_v2  ;;  %1749 = vmatprep.subr.bf16.mxu1 %v1807_v4  ;;  %v1785_v19 = vld [vmem:[%s1877_s7 + $0x60] sm:$0xff]   ;;  %v1786_v20 = vld [vmem:[%s1877_s7 + $0x68] sm:$0xff]   ;;  %v1787_v21 = vld [vmem:[%s1877_s7 + $0x70] sm:$0xff]  }
  0x13   : > { %v1788_v22 = vld [vmem:[%s1877_s7 + $0x78] sm:$0xff]   ;;  %v1789_v23 = vld [vmem:[%s1877_s7 + $0x80] sm:$0xff]   ;;  %v1790_v24 = vld [vmem:[%s1877_s7 + $0x88] sm:$0xff]  }
  0x14   : > { %1604 = vmatmul.mubr.msk.bf16.vlgmr.msra.gmra.mxu0 %vm476_vm0, %v1774_v6  ;;  %v1791_v25 = vld [vmem:[%s1877_s7 + $0x90] sm:$0xff]   ;;  %v1792_v27 = vld [vmem:[%s1877_s7 + $0x98] sm:$0xff]   ;;  %v1793_v29 = vld [vmem:[%s1877_s7 + $0xa0] sm:$0xff]  }
  0x15   : > { %1607 = vmatprep.mubr.msk.bf16.mxu0 %vm476_vm0, %v1775_v7  ;;  %1668 = vmatpush3.bf16.msra.mxu0 %v1805_v2  ;;  %v1812_v30 = vld [vmem:[%s2175_s3] sm:$0xff]   ;;  %v1794_v31 = vld [vmem:[%s1877_s7 + $0xa8] sm:$0xff]   ;;  %v1795_v32 = vld [vmem:[%s1877_s7 + $0xb0] sm:$0xff]  }
  0x16   : > { %1669 = vmatprep.subr.bf16.mxu0 %v1806_v3  ;;  %1757 = vmatpush3.bf16.msra.mxu1 %v1807_v4  ;;  %v1796_v33 = vld [vmem:[%s1877_s7 + $0xb8] sm:$0xff]   ;;  %v1797_v34 = vld [vmem:[%s1877_s7 + $0xc0] sm:$0xff]   ;;  %v1798_v35 = vld [vmem:[%s1877_s7 + $0xc8] sm:$0xff]  }
  0x17   : > { %1750 = vmatprep.subr.bf16.mxu1 %v1808_v8  ;;  %v1799_v36 = vld [vmem:[%s1877_s7 + $0xd0] sm:$0xff]   ;;  %v1800_v37 = vld [vmem:[%s1877_s7 + $0xd8] sm:$0xff]   ;;  %v1801_v38 = vld [vmem:[%s1877_s7 + $0xe0] sm:$0xff]  }
  0x18   : > { %v1802_v39 = vld [vmem:[%s1877_s7 + $0xe8] sm:$0xff]   ;;  %v1803_v40 = vld [vmem:[%s1877_s7 + $0xf0] sm:$0xff]   ;;  %v1804_v41 = vld [vmem:[%s1877_s7 + $0xf8] sm:$0xff]  }
  0x19   : > { %1670 = vmatpush3.bf16.msra.mxu0 %v1806_v3  ;;  %v1964_v44 = vld [vmem:[%s2174_s2] ss:$0 sm:$0xff] }
  0x1a   : > { %1671 = vmatprep.subr.bf16.mxu0 %v1807_v4  ;;  %1758 = vmatpush3.bf16.msra.mxu1 %v1808_v8 }
  0x1b   : > { %1751 = vmatprep.subr.bf16.mxu1 %v1809_v11 }
  0x1c   : > { %1608 = vmatmul.mubr.msk.bf16.gmra.mxu0 %vm476_vm0, %v1776_v9 }
  0x1d   : > { %1611 = vmatprep.mubr.msk.bf16.mxu0 %vm476_vm0, %v1777_v10  ;;  %1672 = vmatpush3.bf16.msra.mxu0 %v1807_v4 }
  0x1e   : > { %1673 = vmatprep.subr.bf16.mxu0 %v1808_v8  ;;  %1759 = vmatpush3.bf16.msra.mxu1 %v1809_v11 }
  0x1f   : > { %1752 = vmatprep.subr.bf16.mxu1 %v1810_v26 }
  0x21   : > { %1674 = vmatpush3.bf16.msra.mxu0 %v1808_v8 }
  0x22   : > { %1675 = vmatprep.subr.bf16.mxu0 %v1809_v11  ;;  %1760 = vmatpush3.bf16.msra.mxu1 %v1810_v26 }
  0x23   : > { %1753 = vmatprep.subr.bf16.mxu1 %v1811_v28 }
  0x24   : > { %1612 = vmatmul.mubr.msk.bf16.gmra.mxu0 %vm476_vm0, %v1778_v12 }
  0x25   : > { %1615 = vmatprep.mubr.msk.bf16.mxu0 %vm476_vm0, %v1779_v13  ;;  %1676 = vmatpush3.bf16.msra.mxu0 %v1809_v11 }
  0x26   : > { %1677 = vmatprep.subr.bf16.mxu0 %v1810_v26  ;;  %1761 = vmatpush3.bf16.msra.mxu1 %v1811_v28 }
  0x27   : > { %1754 = vmatprep.subr.bf16.mxu1 %v1812_v30 }
  0x29   : > { %1678 = vmatpush3.bf16.msra.mxu0 %v1810_v26 }
  0x2a   : > { %1679 = vmatprep.subr.bf16.mxu0 %v1811_v28  ;;  %1762 = vmatpush3.bf16.msra.mxu1 %v1812_v30 }
  0x2c   : > { %1616 = vmatmul.mubr.msk.bf16.gmra.mxu0 %vm476_vm0, %v1780_v14 }
  0x2d   : > { %1619 = vmatprep.mubr.msk.bf16.mxu0 %vm476_vm0, %v1781_v15  ;;  %1680 = vmatpush3.bf16.msra.mxu0 %v1811_v28 }
  0x2e   : > { %1681 = vmatprep.subr.bf16.mxu0 %v1812_v30 }
  0x31   : > { %1682 = vmatpush3.bf16.msra.mxu0 %v1812_v30 }
  0x34   : > { %1620 = vmatmul.mubr.msk.bf16.gmra.mxu0 %vm476_vm0, %v1782_v16 }
  0x35   : > { %1623 = vmatprep.mubr.msk.bf16.mxu0 %vm476_vm0, %v1783_v17 }
  0x3c   : > { %1624 = vmatmul.mubr.msk.bf16.gmra.mxu0 %vm476_vm0, %v1784_v18 }
  0x3d   : > { %1627 = vmatprep.mubr.msk.bf16.mxu0 %vm476_vm0, %v1785_v19 }
  0x44   : > { %1628 = vmatmul.mubr.msk.bf16.gmra.mxu0 %vm476_vm0, %v1786_v20 }
  0x45   : > { %1631 = vmatprep.mubr.msk.bf16.mxu0 %vm476_vm0, %v1787_v21 }
  0x4c   : > { %1632 = vmatmul.mubr.msk.bf16.gmra.mxu0 %vm476_vm0, %v1788_v22 }
  0x4d   : > { %1635 = vmatprep.mubr.msk.bf16.mxu0 %vm476_vm0, %v1789_v23 }
  0x54   : > { %1636 = vmatmul.mubr.msk.bf16.gmra.mxu0 %vm476_vm0, %v1790_v24 }
  0x55   : > { %1639 = vmatprep.mubr.msk.bf16.mxu0 %vm476_vm0, %v1791_v25 }
  0x5c   : > { %1640 = vmatmul.mubr.msk.bf16.gmra.mxu0 %vm476_vm0, %v1792_v27 }
  0x5d   : > { %1643 = vmatprep.mubr.msk.bf16.mxu0 %vm476_vm0, %v1793_v29 }
  0x64   : > { %1644 = vmatmul.mubr.msk.bf16.gmra.mxu0 %vm476_vm0, %v1794_v31 }
  0x65   : > { %1647 = vmatprep.mubr.msk.bf16.mxu0 %vm476_vm0, %v1795_v32 }
  0x6c   : > { %1648 = vmatmul.mubr.msk.bf16.gmra.mxu0 %vm476_vm0, %v1796_v33 }
  0x6d   : > { %1651 = vmatprep.mubr.msk.bf16.mxu0 %vm476_vm0, %v1797_v34 }
  0x74   : > { %1652 = vmatmul.mubr.msk.bf16.gmra.mxu0 %vm476_vm0, %v1798_v35 }
  0x75   : > { %1655 = vmatprep.mubr.msk.bf16.mxu0 %vm476_vm0, %v1799_v36 }
  0x7c   : > { %1656 = vmatmul.mubr.msk.bf16.gmra.mxu0 %vm476_vm0, %v1800_v37 }
  0x7d   : > { %1659 = vmatprep.mubr.msk.bf16.mxu0 %vm476_vm0, %v1801_v38 }
  0x84   : > { %1660 = vmatmul.mubr.msk.bf16.gmra.mxu0 %vm476_vm0, %v1802_v39 }
  0x85   : > { %1663 = vmatprep.mubr.msk.bf16.mxu0 %vm476_vm0, %v1803_v40 }
  0x8c   : > { %1664 = vmatmul.mubr.msk.bf16.gmra.mxu0 %vm476_vm0, %v1804_v41 }
  0xd4   : > { %v1605_v42 = vpop.f32.mrf.mxu0 }
  0xd5   : > { %v616_v48 = vadd.f32 %v1605_v42, %v1964_v44 }
  0xd6   : > { %v607_v43 = vpop.f32.mrf.mxu0 }
  0xd7   : > { %v608_v46 = vadd.f32 %v1964_v44, %v607_v43  ;;  %v864_v55 = vmax.f32 %v616_v48, 0.0 }
  0xd8   : > { %v1606_v45 = vpop.f32.mrf.mxu0 }
  0xd9   : > { %v619_v47 = vadd.f32 %v1606_v45, %v1964_v44  ;;  %v862_v53 = vmax.f32 %v608_v46, 0.0 }
  0xda   : > { %v610_v49 = vpop.f32.mrf.mxu0 }
  0xdb   : > { %v611_v50 = vadd.f32 %v1964_v44, %v610_v49  ;;  %v865_v51 = vmax.f32 %v619_v47, 0.0 }
  0xdc   : > { %v1609_v52 = vpop.f32.mrf.mxu0 }
  0xdd   : > { %v863_v54 = vmax.f32 %v611_v50, 0.0  ;;  %v927_v58 = vpack.c.bf16 %v865_v51, %v864_v55  ;;  %v632_v62 = vadd.f32 %v1609_v52, %v1964_v44 }
  0xde   : > { %v623_v56 = vpop.f32.mrf.mxu0 }
  0xdf   : > { %v926_v57 = vpack.c.bf16 %v863_v54, %v862_v53  ;;  %v624_v60 = vadd.f32 %v1964_v44, %v623_v56  ;;  %v868_v5 = vmax.f32 %v632_v62, 0.0 }
  0xe0   : > { %v1610_v59 = vpop.f32.mrf.mxu0 }
  0xe1   : > { %v635_v61 = vadd.f32 %v1610_v59, %v1964_v44  ;;  %1683 = vmatprep.mubr.bf16.mxu0 %v926_v57  ;;  %v866_v3 = vmax.f32 %v624_v60, 0.0 }
  0xe2   : > { %v626_v63 = vpop.f32.mrf.mxu0  ;;  %1684 = vmatmul.mubr.bf16.vlgmr.msra.gmra.mxu0 %v927_v58 }
  0xe3   : > { %v627_v0 = vadd.f32 %v1964_v44, %v626_v63  ;;  %v869_v1 = vmax.f32 %v635_v61, 0.0 }
  0xe4   : > { %v1613_v2 = vpop.f32.mrf.mxu0 }
  0xe5   : > { %v867_v4 = vmax.f32 %v627_v0, 0.0  ;;  %v929_v8 = vpack.c.bf16 %v869_v1, %v868_v5  ;;  %v648_v12 = vadd.f32 %v1613_v2, %v1964_v44 }
  0xe6   : > { %v639_v6 = vpop.f32.mrf.mxu0 }
  0xe7   : > { %v928_v7 = vpack.c.bf16 %v867_v4, %v866_v3  ;;  %v640_v10 = vadd.f32 %v1964_v44, %v639_v6  ;;  %v872_v19 = vmax.f32 %v648_v12, 0.0 }
  0xe8   : > { %v1614_v9 = vpop.f32.mrf.mxu0 }
  0xe9   : > { %v651_v11 = vadd.f32 %v1614_v9, %v1964_v44  ;;  %1687 = vmatprep.mubr.bf16.mxu1 %v928_v7  ;;  %v870_v17 = vmax.f32 %v640_v10, 0.0 }
  0xea   : > { %v642_v13 = vpop.f32.mrf.mxu0  ;;  %1688 = vmatmul.mubr.bf16.vlgmr.msra.gmra.mxu1 %v929_v8 }
  0xeb   : > { %v643_v14 = vadd.f32 %v1964_v44, %v642_v13  ;;  %v873_v15 = vmax.f32 %v651_v11, 0.0 }
  0xec   : > { %v1617_v16 = vpop.f32.mrf.mxu0 }
  0xed   : > { %v871_v18 = vmax.f32 %v643_v14, 0.0  ;;  %v931_v22 = vpack.c.bf16 %v873_v15, %v872_v19  ;;  %v664_v26 = vadd.f32 %v1617_v16, %v1964_v44 }
  0xee   : > { %v655_v20 = vpop.f32.mrf.mxu0 }
  0xef   : > { %v930_v21 = vpack.c.bf16 %v871_v18, %v870_v17  ;;  %v656_v24 = vadd.f32 %v1964_v44, %v655_v20  ;;  %v876_v33 = vmax.f32 %v664_v26, 0.0 }
  0xf0   : > { %v1618_v23 = vpop.f32.mrf.mxu0 }
  0xf1   : > { %v667_v25 = vadd.f32 %v1618_v23, %v1964_v44  ;;  %1691 = vmatprep.mubr.bf16.mxu1 %v930_v21  ;;  %v874_v31 = vmax.f32 %v656_v24, 0.0 }
  0xf2   : > { %v658_v27 = vpop.f32.mrf.mxu0  ;;  %1692 = vmatmul.mubr.bf16.gmra.mxu1 %v931_v22 }
  0xf3   : > { %v659_v28 = vadd.f32 %v1964_v44, %v658_v27  ;;  %v877_v29 = vmax.f32 %v667_v25, 0.0 }
  0xf4   : > { %v1621_v30 = vpop.f32.mrf.mxu0 }
  0xf5   : > { %v875_v32 = vmax.f32 %v659_v28, 0.0  ;;  %v933_v36 = vpack.c.bf16 %v877_v29, %v876_v33  ;;  %v680_v40 = vadd.f32 %v1621_v30, %v1964_v44 }
  0xf6   : > { %v671_v34 = vpop.f32.mrf.mxu0 }
  0xf7   : > { %v932_v35 = vpack.c.bf16 %v875_v32, %v874_v31  ;;  %v672_v38 = vadd.f32 %v1964_v44, %v671_v34  ;;  %v880_v48 = vmax.f32 %v680_v40, 0.0 }
  0xf8   : > { %v1622_v37 = vpop.f32.mrf.mxu0 }
  0xf9   : > { %v683_v39 = vadd.f32 %v1622_v37, %v1964_v44  ;;  %1695 = vmatprep.mubr.bf16.mxu1 %v932_v35  ;;  %v878_v46 = vmax.f32 %v672_v38, 0.0 }
  0xfa   : > { %v674_v41 = vpop.f32.mrf.mxu0  ;;  %1696 = vmatmul.mubr.bf16.gmra.mxu1 %v933_v36 }
  0xfb   : > { %v675_v42 = vadd.f32 %v1964_v44, %v674_v41  ;;  %v881_v43 = vmax.f32 %v683_v39, 0.0 }
  0xfc   : > { %v1625_v45 = vpop.f32.mrf.mxu0 }
  0xfd   : > { %v879_v47 = vmax.f32 %v675_v42, 0.0  ;;  %v935_v51 = vpack.c.bf16 %v881_v43, %v880_v48  ;;  %v696_v55 = vadd.f32 %v1625_v45, %v1964_v44 }
  0xfe   : > { %v687_v49 = vpop.f32.mrf.mxu0 }
  0xff   : > { %v934_v50 = vpack.c.bf16 %v879_v47, %v878_v46  ;;  %v688_v53 = vadd.f32 %v1964_v44, %v687_v49  ;;  %v884_v62 = vmax.f32 %v696_v55, 0.0 }
 0x100   : > { %v1626_v52 = vpop.f32.mrf.mxu0 }
 0x101   : > { %v699_v54 = vadd.f32 %v1626_v52, %v1964_v44  ;;  %1699 = vmatprep.mubr.bf16.mxu1 %v934_v50  ;;  %v882_v60 = vmax.f32 %v688_v53, 0.0 }
 0x102   : > { %v690_v56 = vpop.f32.mrf.mxu0  ;;  %1700 = vmatmul.mubr.bf16.gmra.mxu1 %v935_v51 }
 0x103   : > { %v691_v57 = vadd.f32 %v1964_v44, %v690_v56  ;;  %v885_v58 = vmax.f32 %v699_v54, 0.0 }
 0x104   : > { %v1629_v59 = vpop.f32.mrf.mxu0 }
 0x105   : > { %v883_v61 = vmax.f32 %v691_v57, 0.0  ;;  %v937_v1 = vpack.c.bf16 %v885_v58, %v884_v62  ;;  %v712_v5 = vadd.f32 %v1629_v59, %v1964_v44 }
 0x106   : > { %v703_v63 = vpop.f32.mrf.mxu0 }
 0x107   : > { %v936_v0 = vpack.c.bf16 %v883_v61, %v882_v60  ;;  %v704_v3 = vadd.f32 %v1964_v44, %v703_v63  ;;  %v888_v12 = vmax.f32 %v712_v5, 0.0 }
 0x108   : > { %v1630_v2 = vpop.f32.mrf.mxu0 }
 0x109   : > { %v715_v4 = vadd.f32 %v1630_v2, %v1964_v44  ;;  %1703 = vmatprep.mubr.bf16.mxu1 %v936_v0  ;;  %v886_v10 = vmax.f32 %v704_v3, 0.0 }
 0x10a   : > { %v706_v6 = vpop.f32.mrf.mxu0  ;;  %1704 = vmatmul.mubr.bf16.gmra.mxu1 %v937_v1 }
 0x10b   : > { %v707_v7 = vadd.f32 %v1964_v44, %v706_v6  ;;  %v889_v8 = vmax.f32 %v715_v4, 0.0 }
 0x10c   : > { %v1633_v9 = vpop.f32.mrf.mxu0 }
 0x10d   : > { %v887_v11 = vmax.f32 %v707_v7, 0.0  ;;  %v939_v15 = vpack.c.bf16 %v889_v8, %v888_v12  ;;  %v728_v19 = vadd.f32 %v1633_v9, %v1964_v44 }
 0x10e   : > { %v719_v13 = vpop.f32.mrf.mxu0 }
 0x10f   : > { %v938_v14 = vpack.c.bf16 %v887_v11, %v886_v10  ;;  %v720_v17 = vadd.f32 %v1964_v44, %v719_v13  ;;  %v892_v26 = vmax.f32 %v728_v19, 0.0 }
 0x110   : > { %v1634_v16 = vpop.f32.mrf.mxu0 }
 0x111   : > { %v731_v18 = vadd.f32 %v1634_v16, %v1964_v44  ;;  %1707 = vmatprep.mubr.bf16.mxu1 %v938_v14  ;;  %v890_v24 = vmax.f32 %v720_v17, 0.0 }
 0x112   : > { %v722_v20 = vpop.f32.mrf.mxu0  ;;  %1708 = vmatmul.mubr.bf16.gmra.mxu1 %v939_v15 }
 0x113   : > { %v723_v21 = vadd.f32 %v1964_v44, %v722_v20  ;;  %v893_v22 = vmax.f32 %v731_v18, 0.0 }
 0x114   : > { %v1637_v23 = vpop.f32.mrf.mxu0 }
 0x115   : > { %v891_v25 = vmax.f32 %v723_v21, 0.0  ;;  %v941_v29 = vpack.c.bf16 %v893_v22, %v892_v26  ;;  %v744_v33 = vadd.f32 %v1637_v23, %v1964_v44 }
 0x116   : > { %v735_v27 = vpop.f32.mrf.mxu0 }
 0x117   : > { %v940_v28 = vpack.c.bf16 %v891_v25, %v890_v24  ;;  %v736_v31 = vadd.f32 %v1964_v44, %v735_v27  ;;  %v896_v40 = vmax.f32 %v744_v33, 0.0 }
 0x118   : > { %v1638_v30 = vpop.f32.mrf.mxu0 }
 0x119   : > { %v747_v32 = vadd.f32 %v1638_v30, %v1964_v44  ;;  %1711 = vmatprep.mubr.bf16.mxu1 %v940_v28  ;;  %v894_v38 = vmax.f32 %v736_v31, 0.0 }
 0x11a   : > { %v738_v34 = vpop.f32.mrf.mxu0  ;;  %1712 = vmatmul.mubr.bf16.gmra.mxu1 %v941_v29 }
 0x11b   : > { %v739_v35 = vadd.f32 %v1964_v44, %v738_v34  ;;  %v897_v36 = vmax.f32 %v747_v32, 0.0 }
 0x11c   : > { %v1641_v37 = vpop.f32.mrf.mxu0 }
 0x11d   : > { %v895_v39 = vmax.f32 %v739_v35, 0.0  ;;  %v943_v43 = vpack.c.bf16 %v897_v36, %v896_v40  ;;  %v760_v48 = vadd.f32 %v1641_v37, %v1964_v44 }
 0x11e   : > { %v751_v41 = vpop.f32.mrf.mxu0 }
 0x11f   : > { %v942_v42 = vpack.c.bf16 %v895_v39, %v894_v38  ;;  %v752_v46 = vadd.f32 %v1964_v44, %v751_v41  ;;  %v900_v55 = vmax.f32 %v760_v48, 0.0 }
 0x120   : > { %v1642_v45 = vpop.f32.mrf.mxu0 }
 0x121   : > { %v763_v47 = vadd.f32 %v1642_v45, %v1964_v44  ;;  %1715 = vmatprep.mubr.bf16.mxu1 %v942_v42  ;;  %v898_v53 = vmax.f32 %v752_v46, 0.0 }
 0x122   : > { %v754_v49 = vpop.f32.mrf.mxu0  ;;  %1716 = vmatmul.mubr.bf16.gmra.mxu1 %v943_v43 }
 0x123   : > { %v755_v50 = vadd.f32 %v1964_v44, %v754_v49  ;;  %v901_v51 = vmax.f32 %v763_v47, 0.0 }
 0x124   : > { %v1645_v52 = vpop.f32.mrf.mxu0 }
 0x125   : > { %v899_v54 = vmax.f32 %v755_v50, 0.0  ;;  %v945_v58 = vpack.c.bf16 %v901_v51, %v900_v55  ;;  %v776_v62 = vadd.f32 %v1645_v52, %v1964_v44 }
 0x126   : > { %v767_v56 = vpop.f32.mrf.mxu0 }
 0x127   : > { %v944_v57 = vpack.c.bf16 %v899_v54, %v898_v53  ;;  %v768_v60 = vadd.f32 %v1964_v44, %v767_v56  ;;  %v904_v5 = vmax.f32 %v776_v62, 0.0 }
 0x128   : > { %v1646_v59 = vpop.f32.mrf.mxu0 }
 0x129   : > { %v779_v61 = vadd.f32 %v1646_v59, %v1964_v44  ;;  %1719 = vmatprep.mubr.bf16.mxu1 %v944_v57  ;;  %v902_v3 = vmax.f32 %v768_v60, 0.0 }
 0x12a   : > { %v770_v63 = vpop.f32.mrf.mxu0  ;;  %1720 = vmatmul.mubr.bf16.gmra.mxu1 %v945_v58 }
 0x12b   : > { %v771_v0 = vadd.f32 %v1964_v44, %v770_v63  ;;  %v905_v1 = vmax.f32 %v779_v61, 0.0 }
 0x12c   : > { %v1649_v2 = vpop.f32.mrf.mxu0 }
 0x12d   : > { %v903_v4 = vmax.f32 %v771_v0, 0.0  ;;  %v947_v8 = vpack.c.bf16 %v905_v1, %v904_v5  ;;  %v792_v12 = vadd.f32 %v1649_v2, %v1964_v44 }
 0x12e   : > { %v783_v6 = vpop.f32.mrf.mxu0 }
 0x12f   : > { %v946_v7 = vpack.c.bf16 %v903_v4, %v902_v3  ;;  %v784_v10 = vadd.f32 %v1964_v44, %v783_v6  ;;  %v908_v19 = vmax.f32 %v792_v12, 0.0 }
 0x130   : > { %v1650_v9 = vpop.f32.mrf.mxu0 }
 0x131   : > { %v795_v11 = vadd.f32 %v1650_v9, %v1964_v44  ;;  %1723 = vmatprep.mubr.bf16.mxu1 %v946_v7  ;;  %v906_v17 = vmax.f32 %v784_v10, 0.0 }
 0x132   : > { %v786_v13 = vpop.f32.mrf.mxu0  ;;  %1724 = vmatmul.mubr.bf16.gmra.mxu1 %v947_v8 }
 0x133   : > { %v787_v14 = vadd.f32 %v1964_v44, %v786_v13  ;;  %v909_v15 = vmax.f32 %v795_v11, 0.0 }
 0x134   : > { %v1653_v16 = vpop.f32.mrf.mxu0 }
 0x135   : > { %v907_v18 = vmax.f32 %v787_v14, 0.0  ;;  %v949_v22 = vpack.c.bf16 %v909_v15, %v908_v19  ;;  %v808_v26 = vadd.f32 %v1653_v16, %v1964_v44  ;;  %v2034_v14 = vld [vmem:[%s2176_s4] ss:$0 sm:$0xff] }
 0x136   : > { %v799_v20 = vpop.f32.mrf.mxu0 }
 0x137   : > { %v948_v21 = vpack.c.bf16 %v907_v18, %v906_v17  ;;  %v800_v24 = vadd.f32 %v1964_v44, %v799_v20  ;;  %v912_v33 = vmax.f32 %v808_v26, 0.0 }
 0x138   : > { %v1654_v23 = vpop.f32.mrf.mxu0 }
 0x139   : > { %v811_v25 = vadd.f32 %v1654_v23, %v1964_v44  ;;  %1727 = vmatprep.mubr.bf16.mxu1 %v948_v21  ;;  %v910_v31 = vmax.f32 %v800_v24, 0.0 }
 0x13a   : > { %v802_v27 = vpop.f32.mrf.mxu0  ;;  %1728 = vmatmul.mubr.bf16.gmra.mxu1 %v949_v22 }
 0x13b   : > { %v803_v28 = vadd.f32 %v1964_v44, %v802_v27  ;;  %v913_v29 = vmax.f32 %v811_v25, 0.0 }
 0x13c   : > { %v1657_v30 = vpop.f32.mrf.mxu0 }
 0x13d   : > { %v911_v32 = vmax.f32 %v803_v28, 0.0  ;;  %v951_v36 = vpack.c.bf16 %v913_v29, %v912_v33  ;;  %v824_v40 = vadd.f32 %v1657_v30, %v1964_v44 }
 0x13e   : > { %v815_v34 = vpop.f32.mrf.mxu0 }
 0x13f   : > { %v950_v35 = vpack.c.bf16 %v911_v32, %v910_v31  ;;  %v816_v38 = vadd.f32 %v1964_v44, %v815_v34  ;;  %v916_v48 = vmax.f32 %v824_v40, 0.0 }
 0x140   : > { %v1658_v37 = vpop.f32.mrf.mxu0 }
 0x141   : > { %v827_v39 = vadd.f32 %v1658_v37, %v1964_v44  ;;  %1731 = vmatprep.mubr.bf16.mxu1 %v950_v35  ;;  %v914_v46 = vmax.f32 %v816_v38, 0.0 }
 0x142   : > { %v818_v41 = vpop.f32.mrf.mxu0  ;;  %1732 = vmatmul.mubr.bf16.gmra.mxu1 %v951_v36 }
 0x143   : > { %v819_v42 = vadd.f32 %v1964_v44, %v818_v41  ;;  %v917_v43 = vmax.f32 %v827_v39, 0.0 }
 0x144   : > { %v1661_v45 = vpop.f32.mrf.mxu0 }
 0x145   : > { %v915_v47 = vmax.f32 %v819_v42, 0.0  ;;  %v953_v51 = vpack.c.bf16 %v917_v43, %v916_v48  ;;  %v840_v55 = vadd.f32 %v1661_v45, %v1964_v44 }
 0x146   : > { %v831_v49 = vpop.f32.mrf.mxu0 }
 0x147   : > { %v952_v50 = vpack.c.bf16 %v915_v47, %v914_v46  ;;  %v832_v53 = vadd.f32 %v1964_v44, %v831_v49  ;;  %v920_v62 = vmax.f32 %v840_v55, 0.0 }
 0x148   : > { %v1662_v52 = vpop.f32.mrf.mxu0 }
 0x149   : > { %v843_v54 = vadd.f32 %v1662_v52, %v1964_v44  ;;  %1735 = vmatprep.mubr.bf16.mxu1 %v952_v50  ;;  %v918_v60 = vmax.f32 %v832_v53, 0.0 }
 0x14a   : > { %v834_v56 = vpop.f32.mrf.mxu0  ;;  %1736 = vmatmul.mubr.bf16.gmra.mxu1 %v953_v51 }
 0x14b   : > { %v835_v57 = vadd.f32 %v1964_v44, %v834_v56  ;;  %v921_v58 = vmax.f32 %v843_v54, 0.0 }
 0x14c   : > { %v1665_v59 = vpop.f32.mrf.mxu0 }
 0x14d   : > { %v919_v61 = vmax.f32 %v835_v57, 0.0  ;;  %v955_v1 = vpack.c.bf16 %v921_v58, %v920_v62  ;;  %v856_v5 = vadd.f32 %v1665_v59, %v1964_v44 }
 0x14e   : > { %v847_v63 = vpop.f32.mrf.mxu0 }
 0x14f   : > { %v954_v0 = vpack.c.bf16 %v919_v61, %v918_v60  ;;  %v848_v3 = vadd.f32 %v1964_v44, %v847_v63  ;;  %v924_v11 = vmax.f32 %v856_v5, 0.0 }
 0x150   : > { %v1666_v2 = vpop.f32.mrf.mxu0 }
 0x151   : > { %v859_v4 = vadd.f32 %v1666_v2, %v1964_v44  ;;  %1739 = vmatprep.mubr.bf16.mxu1 %v954_v0  ;;  %v922_v9 = vmax.f32 %v848_v3, 0.0 }
 0x152   : > { %v850_v6 = vpop.f32.mrf.mxu0  ;;  %1740 = vmatmul.mubr.bf16.gmra.mxu1 %v955_v1 }
 0x153   : > { %v851_v7 = vadd.f32 %v1964_v44, %v850_v6  ;;  %v925_v8 = vmax.f32 %v859_v4, 0.0 }
 0x155   : > { %v923_v10 = vmax.f32 %v851_v7, 0.0  ;;  %v957_v13 = vpack.c.bf16 %v925_v8, %v924_v11 }
 0x157   : > { %v956_v12 = vpack.c.bf16 %v923_v10, %v922_v9 }
 0x159   : > { %1743 = vmatprep.mubr.bf16.mxu1 %v956_v12 }
 0x15a   : > { %1744 = vmatmul.mubr.bf16.gmra.mxu1 %v957_v13 }
 0x1a2   : > { %v1685_v44 = vpop.f32.mrf.mxu0 }
 0x1a3   : > { %v1072_v15 = vadd.f32 %v1685_v44, %v2034_v14 }
 0x1a4   : > { %v1063_v16 = vpop.f32.mrf.mxu0 }
 0x1a5   : > { %1320 = vst [vmem:[%s2039_s29 + $0x10] sm:$0xff] %v1072_v15  ;;  %v1064_v17 = vadd.f32 %v2034_v14, %v1063_v16 }
 0x1a6   : > { %v1686_v18 = vpop.f32.mrf.mxu0 }
 0x1a7   : > { %1318 = vst [vmem:[%s2039_s29] sm:$0xff] %v1064_v17  ;;  %v1075_v19 = vadd.f32 %v1686_v18, %v2034_v14 }
 0x1a8   : > { %v1066_v20 = vpop.f32.mrf.mxu0 }
 0x1a9   : > { %1321 = vst [vmem:[%s2039_s29 + $0x18] sm:$0xff] %v1075_v19  ;;  %v1067_v21 = vadd.f32 %v2034_v14, %v1066_v20 }
 0x1aa   : > { %v1689_v22 = vpop.f32.mrf.mxu1 }
 0x1ab   : > { %1319 = vst [vmem:[%s2039_s29 + $0x8] sm:$0xff] %v1067_v21  ;;  %v1088_v23 = vadd.f32 %v1689_v22, %v2034_v14 }
 0x1ac   : > { %v1079_v24 = vpop.f32.mrf.mxu1 }
 0x1ad   : > { %1324 = vst [vmem:[%s2039_s29 + $0x30] sm:$0xff] %v1088_v23  ;;  %v1080_v25 = vadd.f32 %v2034_v14, %v1079_v24 }
 0x1ae   : > { %v1690_v26 = vpop.f32.mrf.mxu1 }
 0x1af   : > { %1322 = vst [vmem:[%s2039_s29 + $0x20] sm:$0xff] %v1080_v25  ;;  %v1091_v27 = vadd.f32 %v1690_v26, %v2034_v14 }
 0x1b0   : > { %v1082_v28 = vpop.f32.mrf.mxu1 }
 0x1b1   : > { %1325 = vst [vmem:[%s2039_s29 + $0x38] sm:$0xff] %v1091_v27  ;;  %v1083_v29 = vadd.f32 %v2034_v14, %v1082_v28 }
 0x1b2   : > { %v1693_v30 = vpop.f32.mrf.mxu1 }
 0x1b3   : > { %1323 = vst [vmem:[%s2039_s29 + $0x28] sm:$0xff] %v1083_v29  ;;  %v1104_v31 = vadd.f32 %v1693_v30, %v2034_v14 }
 0x1b4   : > { %v1095_v32 = vpop.f32.mrf.mxu1 }
 0x1b5   : > { %1328 = vst [vmem:[%s2039_s29 + $0x50] sm:$0xff] %v1104_v31  ;;  %v1096_v33 = vadd.f32 %v2034_v14, %v1095_v32 }
 0x1b6   : > { %v1694_v34 = vpop.f32.mrf.mxu1 }
 0x1b7   : > { %1326 = vst [vmem:[%s2039_s29 + $0x40] sm:$0xff] %v1096_v33  ;;  %v1107_v35 = vadd.f32 %v1694_v34, %v2034_v14 }
 0x1b8   : > { %v1098_v36 = vpop.f32.mrf.mxu1 }
 0x1b9   : > { %1329 = vst [vmem:[%s2039_s29 + $0x58] sm:$0xff] %v1107_v35  ;;  %v1099_v37 = vadd.f32 %v2034_v14, %v1098_v36 }
 0x1ba   : > { %v1697_v38 = vpop.f32.mrf.mxu1 }
 0x1bb   : > { %1327 = vst [vmem:[%s2039_s29 + $0x48] sm:$0xff] %v1099_v37  ;;  %v1120_v39 = vadd.f32 %v1697_v38, %v2034_v14 }
 0x1bc   : > { %v1111_v40 = vpop.f32.mrf.mxu1 }
 0x1bd   : > { %1332 = vst [vmem:[%s2039_s29 + $0x70] sm:$0xff] %v1120_v39  ;;  %v1112_v41 = vadd.f32 %v2034_v14, %v1111_v40 }
 0x1be   : > { %v1698_v42 = vpop.f32.mrf.mxu1 }
 0x1bf   : > { %1330 = vst [vmem:[%s2039_s29 + $0x60] sm:$0xff] %v1112_v41  ;;  %v1123_v43 = vadd.f32 %v1698_v42, %v2034_v14 }
 0x1c0   : > { %v1114_v45 = vpop.f32.mrf.mxu1 }
 0x1c1   : > { %1333 = vst [vmem:[%s2039_s29 + $0x78] sm:$0xff] %v1123_v43  ;;  %v1115_v46 = vadd.f32 %v2034_v14, %v1114_v45 }
 0x1c2   : > { %v1701_v47 = vpop.f32.mrf.mxu1 }
 0x1c3   : > { %1331 = vst [vmem:[%s2039_s29 + $0x68] sm:$0xff] %v1115_v46  ;;  %v1136_v48 = vadd.f32 %v1701_v47, %v2034_v14 }
 0x1c4   : > { %v1127_v49 = vpop.f32.mrf.mxu1 }
 0x1c5   : > { %1336 = vst [vmem:[%s2039_s29 + $0x90] sm:$0xff] %v1136_v48  ;;  %v1128_v50 = vadd.f32 %v2034_v14, %v1127_v49 }
 0x1c6   : > { %v1702_v51 = vpop.f32.mrf.mxu1 }
 0x1c7   : > { %1334 = vst [vmem:[%s2039_s29 + $0x80] sm:$0xff] %v1128_v50  ;;  %v1139_v52 = vadd.f32 %v1702_v51, %v2034_v14 }
 0x1c8   : > { %v1130_v53 = vpop.f32.mrf.mxu1 }
 0x1c9   : > { %1337 = vst [vmem:[%s2039_s29 + $0x98] sm:$0xff] %v1139_v52  ;;  %v1131_v54 = vadd.f32 %v2034_v14, %v1130_v53 }
 0x1ca   : > { %v1705_v55 = vpop.f32.mrf.mxu1 }
 0x1cb   : > { %1335 = vst [vmem:[%s2039_s29 + $0x88] sm:$0xff] %v1131_v54  ;;  %v1152_v56 = vadd.f32 %v1705_v55, %v2034_v14 }
 0x1cc   : > { %v1143_v57 = vpop.f32.mrf.mxu1 }
 0x1cd   : > { %1340 = vst [vmem:[%s2039_s29 + $0xb0] sm:$0xff] %v1152_v56  ;;  %v1144_v58 = vadd.f32 %v2034_v14, %v1143_v57 }
 0x1ce   : > { %v1706_v59 = vpop.f32.mrf.mxu1 }
 0x1cf   : > { %1338 = vst [vmem:[%s2039_s29 + $0xa0] sm:$0xff] %v1144_v58  ;;  %v1155_v60 = vadd.f32 %v1706_v59, %v2034_v14 }
 0x1d0   : > { %v1146_v61 = vpop.f32.mrf.mxu1 }
 0x1d1   : > { %1341 = vst [vmem:[%s2039_s29 + $0xb8] sm:$0xff] %v1155_v60  ;;  %v1147_v62 = vadd.f32 %v2034_v14, %v1146_v61 }
 0x1d2   : > { %v1709_v63 = vpop.f32.mrf.mxu1 }
 0x1d3   : > { %1339 = vst [vmem:[%s2039_s29 + $0xa8] sm:$0xff] %v1147_v62  ;;  %v1168_v0 = vadd.f32 %v1709_v63, %v2034_v14 }
 0x1d4   : > { %v1159_v1 = vpop.f32.mrf.mxu1 }
 0x1d5   : > { %1344 = vst [vmem:[%s2039_s29 + $0xd0] sm:$0xff] %v1168_v0  ;;  %v1160_v2 = vadd.f32 %v2034_v14, %v1159_v1 }
 0x1d6   : > { %v1710_v3 = vpop.f32.mrf.mxu1 }
 0x1d7   : > { %1342 = vst [vmem:[%s2039_s29 + $0xc0] sm:$0xff] %v1160_v2  ;;  %v1171_v4 = vadd.f32 %v1710_v3, %v2034_v14 }
 0x1d8   : > { %v1162_v5 = vpop.f32.mrf.mxu1 }
 0x1d9   : > { %1345 = vst [vmem:[%s2039_s29 + $0xd8] sm:$0xff] %v1171_v4  ;;  %v1163_v6 = vadd.f32 %v2034_v14, %v1162_v5 }
 0x1da   : > { %v1713_v7 = vpop.f32.mrf.mxu1 }
 0x1db   : > { %1343 = vst [vmem:[%s2039_s29 + $0xc8] sm:$0xff] %v1163_v6  ;;  %v1184_v8 = vadd.f32 %v1713_v7, %v2034_v14 }
 0x1dc   : > { %v1175_v9 = vpop.f32.mrf.mxu1 }
 0x1dd   : > { %1348 = vst [vmem:[%s2039_s29 + $0xf0] sm:$0xff] %v1184_v8  ;;  %v1176_v10 = vadd.f32 %v2034_v14, %v1175_v9 }
 0x1de   : > { %v1714_v11 = vpop.f32.mrf.mxu1 }
 0x1df   : > { %1346 = vst [vmem:[%s2039_s29 + $0xe0] sm:$0xff] %v1176_v10  ;;  %v1187_v12 = vadd.f32 %v1714_v11, %v2034_v14 }
 0x1e0   : > { %v1178_v13 = vpop.f32.mrf.mxu1 }
 0x1e1   : > { %1349 = vst [vmem:[%s2039_s29 + $0xf8] sm:$0xff] %v1187_v12  ;;  %v1179_v44 = vadd.f32 %v2034_v14, %v1178_v13 }
 0x1e2   : > { %v1717_v15 = vpop.f32.mrf.mxu1 }
 0x1e3   : > { %1347 = vst [vmem:[%s2039_s29 + $0xe8] sm:$0xff] %v1179_v44  ;;  %v1200_v16 = vadd.f32 %v1717_v15, %v2034_v14 }
 0x1e4   : > { %v1191_v17 = vpop.f32.mrf.mxu1 }
 0x1e5   : > { %1352 = vst [vmem:[%s2039_s29 + $0x110] sm:$0xff] %v1200_v16  ;;  %v1192_v18 = vadd.f32 %v2034_v14, %v1191_v17 }
 0x1e6   : > { %v1718_v19 = vpop.f32.mrf.mxu1 }
 0x1e7   : > { %1350 = vst [vmem:[%s2039_s29 + $0x100] sm:$0xff] %v1192_v18  ;;  %v1203_v20 = vadd.f32 %v1718_v19, %v2034_v14 }
 0x1e8   : > { %v1194_v21 = vpop.f32.mrf.mxu1 }
 0x1e9   : > { %1353 = vst [vmem:[%s2039_s29 + $0x118] sm:$0xff] %v1203_v20  ;;  %v1195_v22 = vadd.f32 %v2034_v14, %v1194_v21 }
 0x1ea   : > { %v1721_v23 = vpop.f32.mrf.mxu1 }
 0x1eb   : > { %1351 = vst [vmem:[%s2039_s29 + $0x108] sm:$0xff] %v1195_v22  ;;  %v1216_v24 = vadd.f32 %v1721_v23, %v2034_v14 }
 0x1ec   : > { %v1207_v25 = vpop.f32.mrf.mxu1 }
 0x1ed   : > { %1356 = vst [vmem:[%s2039_s29 + $0x130] sm:$0xff] %v1216_v24  ;;  %v1208_v26 = vadd.f32 %v2034_v14, %v1207_v25 }
 0x1ee   : > { %v1722_v27 = vpop.f32.mrf.mxu1 }
 0x1ef   : > { %1354 = vst [vmem:[%s2039_s29 + $0x120] sm:$0xff] %v1208_v26  ;;  %v1219_v28 = vadd.f32 %v1722_v27, %v2034_v14 }
 0x1f0   : > { %v1210_v29 = vpop.f32.mrf.mxu1 }
 0x1f1   : > { %1357 = vst [vmem:[%s2039_s29 + $0x138] sm:$0xff] %v1219_v28  ;;  %v1211_v30 = vadd.f32 %v2034_v14, %v1210_v29 }
 0x1f2   : > { %v1725_v31 = vpop.f32.mrf.mxu1 }
 0x1f3   : > { %1355 = vst [vmem:[%s2039_s29 + $0x128] sm:$0xff] %v1211_v30  ;;  %v1232_v32 = vadd.f32 %v1725_v31, %v2034_v14 }
 0x1f4   : > { %v1223_v33 = vpop.f32.mrf.mxu1 }
 0x1f5   : > { %1360 = vst [vmem:[%s2039_s29 + $0x150] sm:$0xff] %v1232_v32  ;;  %v1224_v34 = vadd.f32 %v2034_v14, %v1223_v33 }
 0x1f6   : > { %v1726_v35 = vpop.f32.mrf.mxu1 }
 0x1f7   : > { %1358 = vst [vmem:[%s2039_s29 + $0x140] sm:$0xff] %v1224_v34  ;;  %v1235_v36 = vadd.f32 %v1726_v35, %v2034_v14 }
 0x1f8   : > { %v1226_v37 = vpop.f32.mrf.mxu1 }
 0x1f9   : > { %1361 = vst [vmem:[%s2039_s29 + $0x158] sm:$0xff] %v1235_v36  ;;  %v1227_v38 = vadd.f32 %v2034_v14, %v1226_v37 }
 0x1fa   : > { %v1729_v39 = vpop.f32.mrf.mxu1 }
 0x1fb   : > { %1359 = vst [vmem:[%s2039_s29 + $0x148] sm:$0xff] %v1227_v38  ;;  %v1248_v40 = vadd.f32 %v1729_v39, %v2034_v14 }
 0x1fc   : > { %v1239_v41 = vpop.f32.mrf.mxu1 }
 0x1fd   : > { %1364 = vst [vmem:[%s2039_s29 + $0x170] sm:$0xff] %v1248_v40  ;;  %v1240_v42 = vadd.f32 %v2034_v14, %v1239_v41 }
 0x1fe   : > { %v1730_v43 = vpop.f32.mrf.mxu1 }
 0x1ff   : > { %1362 = vst [vmem:[%s2039_s29 + $0x160] sm:$0xff] %v1240_v42  ;;  %v1251_v45 = vadd.f32 %v1730_v43, %v2034_v14 }
 0x200   : > { %v1242_v46 = vpop.f32.mrf.mxu1 }
 0x201   : > { %1365 = vst [vmem:[%s2039_s29 + $0x178] sm:$0xff] %v1251_v45  ;;  %v1243_v47 = vadd.f32 %v2034_v14, %v1242_v46 }
 0x202   : > { %v1733_v48 = vpop.f32.mrf.mxu1 }
 0x203   : > { %1363 = vst [vmem:[%s2039_s29 + $0x168] sm:$0xff] %v1243_v47  ;;  %v1264_v49 = vadd.f32 %v1733_v48, %v2034_v14 }
 0x204   : > { %v1255_v50 = vpop.f32.mrf.mxu1 }
 0x205   : > { %1368 = vst [vmem:[%s2039_s29 + $0x190] sm:$0xff] %v1264_v49  ;;  %v1256_v51 = vadd.f32 %v2034_v14, %v1255_v50 }
 0x206   : > { %v1734_v52 = vpop.f32.mrf.mxu1 }
 0x207   : > { %1366 = vst [vmem:[%s2039_s29 + $0x180] sm:$0xff] %v1256_v51  ;;  %v1267_v53 = vadd.f32 %v1734_v52, %v2034_v14 }
 0x208   : > { %v1258_v54 = vpop.f32.mrf.mxu1 }
 0x209   : > { %1369 = vst [vmem:[%s2039_s29 + $0x198] sm:$0xff] %v1267_v53  ;;  %v1259_v55 = vadd.f32 %v2034_v14, %v1258_v54 }
 0x20a   : > { %v1737_v56 = vpop.f32.mrf.mxu1 }
 0x20b   : > { %1367 = vst [vmem:[%s2039_s29 + $0x188] sm:$0xff] %v1259_v55  ;;  %v1280_v57 = vadd.f32 %v1737_v56, %v2034_v14 }
 0x20c   : > { %v1271_v58 = vpop.f32.mrf.mxu1 }
 0x20d   : > { %1372 = vst [vmem:[%s2039_s29 + $0x1b0] sm:$0xff] %v1280_v57  ;;  %v1272_v59 = vadd.f32 %v2034_v14, %v1271_v58 }
 0x20e   : > { %v1738_v60 = vpop.f32.mrf.mxu1 }
 0x20f   : > { %1370 = vst [vmem:[%s2039_s29 + $0x1a0] sm:$0xff] %v1272_v59  ;;  %v1283_v61 = vadd.f32 %v1738_v60, %v2034_v14 }
 0x210   : > { %v1274_v62 = vpop.f32.mrf.mxu1 }
 0x211   : > { %1373 = vst [vmem:[%s2039_s29 + $0x1b8] sm:$0xff] %v1283_v61  ;;  %v1275_v63 = vadd.f32 %v2034_v14, %v1274_v62 }
 0x212   : > { %v1741_v0 = vpop.f32.mrf.mxu1 }
 0x213   : > { %1371 = vst [vmem:[%s2039_s29 + $0x1a8] sm:$0xff] %v1275_v63  ;;  %v1296_v1 = vadd.f32 %v1741_v0, %v2034_v14 }
 0x214   : > { %v1287_v2 = vpop.f32.mrf.mxu1 }
 0x215   : > { %1376 = vst [vmem:[%s2039_s29 + $0x1d0] sm:$0xff] %v1296_v1  ;;  %v1288_v3 = vadd.f32 %v2034_v14, %v1287_v2 }
 0x216   : > { %v1742_v4 = vpop.f32.mrf.mxu1 }
 0x217   : > { %1374 = vst [vmem:[%s2039_s29 + $0x1c0] sm:$0xff] %v1288_v3  ;;  %v1299_v5 = vadd.f32 %v1742_v4, %v2034_v14 }
 0x218   : > { %v1290_v6 = vpop.f32.mrf.mxu1 }
 0x219   : > { %1377 = vst [vmem:[%s2039_s29 + $0x1d8] sm:$0xff] %v1299_v5  ;;  %v1291_v7 = vadd.f32 %v2034_v14, %v1290_v6 }
 0x21a   : > { %v1745_v8 = vpop.f32.mrf.mxu1 }
 0x21b   : > { %1375 = vst [vmem:[%s2039_s29 + $0x1c8] sm:$0xff] %v1291_v7  ;;  %v1312_v9 = vadd.f32 %v1745_v8, %v2034_v14 }
 0x21c   : > { %v1303_v10 = vpop.f32.mrf.mxu1 }
 0x21d   : > { %1380 = vst [vmem:[%s2039_s29 + $0x1f0] sm:$0xff] %v1312_v9  ;;  %v1304_v11 = vadd.f32 %v2034_v14, %v1303_v10 }
 0x21e   : > { %v1746_v12 = vpop.f32.mrf.mxu1 }
 0x21f   : > { %1378 = vst [vmem:[%s2039_s29 + $0x1e0] sm:$0xff] %v1304_v11  ;;  %v1315_v13 = vadd.f32 %v1746_v12, %v2034_v14 }
 0x220   : > { %v1306_v44 = vpop.f32.mrf.mxu1 }
 0x221   : > { %1381 = vst [vmem:[%s2039_s29 + $0x1f8] sm:$0xff] %v1315_v13  ;;  %v1307_v15 = vadd.f32 %v2034_v14, %v1306_v44 }
 0x223   : > { %1379 = vst [vmem:[%s2039_s29 + $0x1e8] sm:$0xff] %v1307_v15 }
 0x224 PF: > { %s15_s18 = sadd.s32 1, %s1819_s18  }
 0x225   : > { %p12_p4 = scmp.ge.s32.totalorder %s15_s18, 4  }
 0x227   :  { %14 = sbr.rel (!%p12_p4) target bundleno = 1 (0x1), region = 70 }

</bundles_post_ra>
